<compile_context>
chip_gen: v6e
topology: v6e:2x2x1
jax: 0.10.0
libtpu: 0.0.40
codegen_flags: <defaults>
</compile_context>

<pallas_src>
import functools

import jax
import jax.numpy as jnp
from jax.experimental import pallas as pl
from jax.experimental.pallas import tpu as pltpu


_ROW_BLOCK_MAX = 512          # multiple of 8/16/32 -> valid sublane tiling for f32/bf16/int8
_TILE_BYTES_TARGET = 4 << 20  # ~4 MiB per tile; 2 x (in + out) double-buffered ~= 16 MiB
_VMEM_LIMIT_BYTES = 32 << 20  # raise v5e's 16 MiB scoped default; matches v6e/v7x defaults


def _copy_kernel(x_ref, o_ref):
    # Lane-dense pure copy: the chomp is expressed entirely by the BlockSpecs
    # (the grid only covers the first L_out columns of the input).
    o_ref[...] = x_ref[...]


def _slice_kernel(x_ref, o_ref, *, l_out):
    # Short-length fallback: block covers the full length; static slice drops the tail.
    o_ref[...] = x_ref[:, :l_out]


def chomp1d(x: jax.Array, chomp_size: int) -> jax.Array:
    """Pallas equivalent of PyTorch Chomp1d on an NCL tensor."""
    # TODO(synk): when the upstream causal Conv1d is also a Pallas kernel, fuse this
    # slice into its out_specs instead of paying a full extra HBM round trip here.
    assert chomp_size > 0, "chomp_size must be positive (matches x[:, :, :-k])"
    n, c, l = x.shape
    l_out = l - chomp_size
    assert l_out > 0, "chomp_size must be smaller than the length dimension"

    # Flatten NCL -> (N*C, L): contiguous, free reshape that turns many tiny
    # per-batch slabs into one long, densely-tileable row axis.
    r = n * c
    x2 = x.reshape(r, l)
    itemsize = jnp.dtype(x.dtype).itemsize

    # Row block: full row extent when small (always legal), else 512 (multiple
    # of 8/16/32); trailing partial blocks are handled by Pallas masking.
    row_block = r if r <= _ROW_BLOCK_MAX else _ROW_BLOCK_MAX

    if l_out >= 128:
        # Lane-dense path: 128-multiple column blocks -> unmasked output stores
        # (except a single trailing partial block) and no HBM reads of the
        # chomped tail (input grid only spans the first L_out columns).
        col_cap = max(128, (_TILE_BYTES_TARGET // (row_block * itemsize)) // 128 * 128)
        col_block = min(col_cap, pl.cdiv(l_out, 128) * 128)
        grid = (pl.cdiv(r, row_block), pl.cdiv(l_out, col_block))
        y2 = pl.pallas_call(
            _copy_kernel,
            out_shape=jax.ShapeDtypeStruct((r, l_out), x.dtype),
            grid=grid,
            in_specs=[pl.BlockSpec((row_block, col_block), lambda i, j: (i, j))],
            out_specs=pl.BlockSpec((row_block, col_block), lambda i, j: (i, j)),
            compiler_params=pltpu.CompilerParams(
                dimension_semantics=("parallel", "parallel"),
                vmem_limit_bytes=_VMEM_LIMIT_BYTES,
            ),
        )(x2)
    else:
        # Small-length path (e.g. the demo shape): blocks span the full (sub-128)
        # length axis, which is legal because they equal the array dims.
        grid = (pl.cdiv(r, row_block),)
        kernel = functools.partial(_slice_kernel, l_out=l_out)
        y2 = pl.pallas_call(
            kernel,
            out_shape=jax.ShapeDtypeStruct((r, l_out), x.dtype),
            grid=grid,
            in_specs=[pl.BlockSpec((row_block, l), lambda i: (i, 0))],
            out_specs=pl.BlockSpec((row_block, l_out), lambda i: (i, 0)),
            compiler_params=pltpu.CompilerParams(
                dimension_semantics=("parallel",),
                vmem_limit_bytes=_VMEM_LIMIT_BYTES,
            ),
        )(x2)

    return y2.reshape(n, c, l_out)


if __name__ == "__main__":
    key = jax.random.PRNGKey(0)

    # Primary check: small NCL input matching the TCN module usage.
    chomp_size = 2
    x = jax.random.normal(key, (2, 4, 16), dtype=jnp.float32)
    y = jax.block_until_ready(chomp1d(x, chomp_size))
    ref = x[:, :, :-chomp_size]
    assert y.shape == (2, 4, 16 - chomp_size), y.shape
    assert y.dtype == x.dtype
    assert jnp.array_equal(y, ref), "Pallas chomp output mismatch (small path)"

    # Secondary check: slightly longer length to exercise the lane-dense
    # (128-tiled) path, still a tiny tensor.
    chomp_size2 = 4
    x2 = jax.random.normal(jax.random.PRNGKey(0), (2, 8, 384), dtype=jnp.float32)
    y2 = jax.block_until_ready(chomp1d(x2, chomp_size2))
    ref2 = x2[:, :, :-chomp_size2]
    assert y2.shape == (2, 8, 384 - chomp_size2), y2.shape
    assert jnp.array_equal(y2, ref2), "Pallas chomp output mismatch (tiled path)"

    print("KERNEL_OK")
</pallas_src>

<mosaic_0001>
module attributes {stable_mosaic.version = 11 : i64} {
  func.func @_slice_kernel(%arg0: i32, %arg1: memref<8x16xf32, #tpu.memory_space<vmem>>, %arg2: memref<8x14xf32, #tpu.memory_space<vmem>>) attributes {dimension_semantics = [#tpu.dimension_semantics<parallel>], iteration_bounds = array<i64: 1>, scalar_prefetch = 0 : i64, scratch_operands = 0 : i64, tpu.core_type = #tpu.core_type<tc>, window_params = [{transform_indices = @transform_0, window_bounds = array<i64: 8, 16>}, {transform_indices = @transform_1, window_bounds = array<i64: 8, 14>}]} {
    %c0 = arith.constant 0 : index
    %c0_0 = arith.constant 0 : index
    %0 = vector.load %arg1[%c0, %c0_0] : memref<8x16xf32, #tpu.memory_space<vmem>>, vector<8x14xf32>
    %c0_1 = arith.constant 0 : index
    %c0_2 = arith.constant 0 : index
    %1 = vector.load %arg2[%c0_1, %c0_2] : memref<8x14xf32, #tpu.memory_space<vmem>>, vector<8x14xf32>
    tpu.vector_store %arg2[%c0_1, %c0_2], %0 {strides = array<i32>} : memref<8x14xf32, #tpu.memory_space<vmem>>, vector<8x14xf32>,
    return
  }
  func.func @transform_0(%arg0: i32) -> (i32, i32) {
    %c0_i32 = arith.constant 0 : i32
    %c0_i32_0 = arith.constant 0 : i32
    return %arg0, %c0_i32 : i32, i32
  }
  func.func @transform_1(%arg0: i32) -> (i32, i32) {
    %c0_i32 = arith.constant 0 : i32
    %c0_i32_0 = arith.constant 0 : i32
    return %arg0, %c0_i32 : i32, i32
  }
}

</mosaic_0001>

<bundles_post_ra>
// kernel: tpu_custom_call.1
= control target key start
LH: loop header
LB: loop body
LE: loop exit
PB: predicated region body
PF: predicated region fallthrough
CT: control target
= control target key end

     0   :  { %6 = vsyncpa [#allocation3], 0  ;;  %s103_s0 = inlined_call_operand.hbm [shape: f32[8,16], index: 0, kind: input, shape index: {}]   ;;  %s104_s1 = inlined_call_operand.hbm [shape: f32[8,14], index: 1, kind: output, shape index: {}]  }
   0x1   :  { %7 = vsyncpa [#allocation4], 0  ;;  %s85_s6 = smov [#allocation2]  }
   0x2   :  { %s14_s7 = sshll.u32 %s85_s6, 4  ;;  %s15_s7 = int_to_ptr.vmem [resolvable:$true] %s14_s7 }
   0x3   :  { %s49_s8 = scalar_lea.vmem %s15_s7, 128  ;;  %p54_p1 = scmp.lt.s32.totalorder %s15_s7, %s15_s7 }
   0x4   :  { %p50_p0 = scmp.ne.s32.totalorder %s15_s7, %s49_s8  ;;  %p55_p2 = scmp.lt.s32.totalorder %s49_s8, %s49_s8 }
   0x6   :  { %p56_p3 = por %p55_p2, %p54_p1 }
   0x8   :  { %p57_p4 = pnand %p56_p3, %p50_p0 }
   0xa   :  { %60 = shalt.err (!%p57_p4)
}
   0xb   :  { %17 = dma.hbm_to_vmem [thread:$0]  %s103_s0, 128, %s15_s7, [#allocation3]  }
   0xc   :  { %81 = dma.done.wait [#allocation3], 128  }
   0xd   :  { %82 = vsyncadd [#allocation3], 4294967168  ;;  %s86_s11 = smov [#allocation5]   ;;  %vm22_vm0 = vcmask 113664   ;;  %v21_v0 = vld [vmem:[#allocation2] sm:$0xff] }
   0xe   :  { %s30_s12 = sshll.u32 %s86_s11, 4  ;;  %23 = vst.msk [vmem:[#allocation5] sm:$0xff] %vm22_vm0, %v21_v0  ;;  %s31_s12 = int_to_ptr.vmem [resolvable:$true] %s30_s12 }
   0xf   :  { %s61_s13 = scalar_lea.vmem %s31_s12, 128  ;;  %p66_p6 = scmp.lt.s32.totalorder %s31_s12, %s31_s12 }
  0x10   :  { %p62_p5 = scmp.ne.s32.totalorder %s31_s12, %s61_s13  ;;  %p67_p7 = scmp.lt.s32.totalorder %s61_s13, %s61_s13 }
  0x12   :  { %p68_p8 = por %p67_p7, %p66_p6 }
  0x14   :  { %p69_p9 = pnand %p68_p8, %p62_p5 }
  0x16   :  { %72 = shalt.err (!%p69_p9)
}
  0x17   :  { %33 = dma.vmem_to_hbm [thread:$0]  %s31_s12, 128, %s104_s1, [#allocation4]  }
  0x18   :  { %83 = dma.done.wait [#allocation4], 128  }
  0x19   :  { %84 = vsyncadd [#allocation4], 4294967168 }
  0x1a   :  { %37 = vsyncpa [#allocation3], 1 }
  0x1b   :  { %38 = vsyncpa [#allocation4], 1 }

</bundles_post_ra>
